<compile_context>
chip_gen: v5e
topology: v5e:2x2
jax: 0.10.0
libtpu: 0.0.40
codegen_flags: <defaults>
</compile_context>

<pallas_src>
import functools

import jax
import jax.numpy as jnp
from jax.experimental import pallas as pl
from jax.experimental.pallas import tpu as pltpu

_EPS = 1e-6
_LANES = 128
_SUBLANES = 8


def _round_up(v, m):
    return ((v + m - 1) // m) * m


def _soft_argmax_loss_kernel(x_ref, p_ref, t_ref, o_ref, *,
                             compute_dtype, tile_rows, n_valid_rows,
                             needs_row_mask, eps):
    # x_ref: (TR, HW)    heatmap rows, native dtype
    # p_ref: (HW, 128)   bf16; col0 = pos_x, col1 = pos_y, col2 = 1.0, rest 0
    # t_ref: (TR, 2)     f32 targets [x, y]
    # o_ref: (1, 1, 128) per-tile partial loss (lane-dense broadcast)
    x = x_ref[...].astype(compute_dtype)

    # Numerically-stable softmax numerator: row max (XLU) + exp (EUP).
    # bf16 inputs stay bf16 end-to-end here (2x VPU/EUP on v6e/v7x).
    m = jnp.max(x, axis=-1, keepdims=True)
    e = jnp.exp(x - m)

    # One single-pass bf16 MXU matmul with f32 accumulation replaces the three
    # cross-lane reductions:
    #   r[:, 0] = sum(pos_x * e), r[:, 1] = sum(pos_y * e), r[:, 2] = sum(e)
    r = jnp.dot(e.astype(jnp.bfloat16), p_ref[...],
                preferred_element_type=jnp.float32)

    inv = 1.0 / (r[:, 2:3] + eps)          # (TR, 1) — tiny, exact f32 divide
    exp_x = r[:, 0:1] * inv
    exp_y = r[:, 1:2] * inv

    t = t_ref[...]
    dx = exp_x - t[:, 0:1]
    dy = exp_y - t[:, 1:2]
    sq = dx * dx + dy * dy                 # (TR, 1)

    if needs_row_mask:
        # Ragged last tile: rows beyond BJ hold garbage (possibly NaN/Inf) but
        # are row-independent; jnp.where selects 0.0 for them, never multiplies.
        row = (pl.program_id(0) * tile_rows
               + jax.lax.broadcasted_iota(jnp.int32, (tile_rows, 1), 0))
        sq = jnp.where(row < n_valid_rows, sq, 0.0)

    o_ref[...] = jnp.full((1, 1, _LANES), jnp.sum(sq), dtype=jnp.float32)


def spatial_soft_argmax_2d_loss(output, target, *, tile_rows=None):
    """output: (B, J, H, W) float heatmaps; target: (B, J, 2) joint coords.

    Returns the scalar sum-of-squared-errors loss (PyTorch module semantics,
    weighted_mse_loss with size_average=False).
    """
    B, J, H, W = output.shape
    BJ, HW = B * J, H * W
    in_dtype = output.dtype
    # bf16 heatmaps keep the whole vector path in bf16; everything else in f32.
    compute_dtype = jnp.bfloat16 if in_dtype == jnp.bfloat16 else jnp.float32

    # ---- heatmaps: native dtype, UNPADDED (no extra HBM round trip) ----
    x = output.reshape(BJ, HW)
    t = target.reshape(BJ, 2).astype(jnp.float32)

    rows = BJ
    if rows < _SUBLANES:
        # Tiny edge case only: the minimal (8, .) block needs >= 8 rows.
        x = jnp.pad(x, ((0, _SUBLANES - rows), (0, 0)))
        t = jnp.pad(t, ((0, _SUBLANES - rows), (0, 0)))
        rows = _SUBLANES

    # ---- coordinate/ones matrix P: (HW, 128) bf16, resident across the grid ----
    # (coordinates 0..W-1 and 1.0 are exact in bf16)
    ys_grid, xs_grid = jnp.meshgrid(
        jnp.arange(H, dtype=jnp.float32),
        jnp.arange(W, dtype=jnp.float32),
        indexing="ij",
    )
    p = jnp.zeros((HW, _LANES), dtype=jnp.float32)
    p = p.at[:, 0].set(xs_grid.reshape(-1))
    p = p.at[:, 1].set(ys_grid.reshape(-1))
    p = p.at[:, 2].set(1.0)
    p = p.astype(jnp.bfloat16)

    # ---- generation-aware VMEM budget & row-tile sizing ----
    try:
        vmem_cap = int(pltpu.get_tpu_info().vmem_capacity_bytes)
    except Exception:
        vmem_cap = 64 * 1024 * 1024            # conservative (v7x per-core)
    vmem_limit = int(min((vmem_cap * 3) // 4, 100 * 1024 * 1024))

    in_isz = jnp.dtype(in_dtype).itemsize
    c_isz = jnp.dtype(compute_dtype).itemsize
    p_bytes = 2 * HW * _LANES * 2              # resident P (double-buffer accounted)
    # x double-buffered + compute copy + e + bf16 dot operand + misc per-row
    bytes_per_row = HW * (2 * in_isz + 2 * c_isz + 2) + 4 * _LANES
    tile_budget = max(min(vmem_cap // 2, 48 * 1024 * 1024) - p_bytes,
                      2 * 1024 * 1024)

    if tile_rows is None:
        tile_rows = tile_budget // max(bytes_per_row, 1)
    tile_rows = max(_SUBLANES, (int(tile_rows) // _SUBLANES) * _SUBLANES)
    # Keep >= 2 grid steps when possible so the "parallel" axis can use both
    # v7x TensorCores; never exceed the (8-rounded) row count.
    tile_rows = min(tile_rows,
                    _round_up(pl.cdiv(rows, 2), _SUBLANES),
                    _round_up(rows, _SUBLANES))
    num_tiles = pl.cdiv(rows, tile_rows)

    kernel = functools.partial(
        _soft_argmax_loss_kernel,
        compute_dtype=compute_dtype,
        tile_rows=tile_rows,
        n_valid_rows=BJ,
        needs_row_mask=(rows != BJ) or (rows % tile_rows != 0),
        eps=_EPS,
    )

    partials = pl.pallas_call(
        kernel,
        out_shape=jax.ShapeDtypeStruct((num_tiles, 1, _LANES), jnp.float32),
        grid=(num_tiles,),
        in_specs=[
            pl.BlockSpec((tile_rows, HW), lambda i: (i, 0)),
            pl.BlockSpec((HW, _LANES), lambda i: (0, 0)),   # resident: DMA'd once
            pl.BlockSpec((tile_rows, 2), lambda i: (i, 0)),
        ],
        out_specs=pl.BlockSpec((1, 1, _LANES), lambda i: (i, 0, 0)),
        compiler_params=pltpu.CompilerParams(
            dimension_semantics=("parallel",),
            vmem_limit_bytes=vmem_limit,
        ),
    )(x, p, t)

    # One lane-dense partial per tile; finish the sum outside the kernel.
    return jnp.sum(partials[:, 0, 0])


def _reference_loss(output, target):
    """Pure-JAX f32 reference mirroring the PyTorch forward."""
    B, J, H, W = output.shape
    x = output.reshape(B, J, H * W).astype(jnp.float32)
    e = jnp.exp(x - jnp.max(x, axis=-1, keepdims=True))
    inv = 1.0 / (jnp.sum(e, axis=-1, keepdims=True) + _EPS)
    ys, xs = jnp.meshgrid(
        jnp.arange(H, dtype=jnp.float32),
        jnp.arange(W, dtype=jnp.float32),
        indexing="ij",
    )
    pos_x = xs.reshape(-1)
    pos_y = ys.reshape(-1)
    exp_y = jnp.sum(pos_y * e * inv, axis=-1, keepdims=True)
    exp_x = jnp.sum(pos_x * e * inv, axis=-1, keepdims=True)
    pred = jnp.concatenate([exp_x, exp_y], axis=-1).reshape(B, -1)
    gt = target.reshape(B, -1).astype(jnp.float32)
    return jnp.sum((pred - gt) ** 2)


def _check(output, target, rtol=1e-3, atol=1e-3, **kw):
    loss = spatial_soft_argmax_2d_loss(output, target, **kw)
    jax.block_until_ready(loss)
    ref = _reference_loss(output, target)
    assert jnp.allclose(loss, ref, rtol=rtol, atol=atol), (loss, ref)


if __name__ == "__main__":
    key = jax.random.PRNGKey(0)
    k1, k2, k3, k4, k5, k6 = jax.random.split(key, 6)

    # 1) Base case: (B, J, H, W) = (2, 4, 16, 16), f32.
    B, J, H, W = 2, 4, 16, 16
    out1 = jax.random.normal(k1, (B, J, H, W), dtype=jnp.float32)
    tgt1 = jax.random.uniform(k2, (B, J, 2), dtype=jnp.float32,
                              minval=0.0, maxval=float(W - 1))
    _check(out1, tgt1)

    # 2) Same case with bf16 heatmaps (bf16 vector path + bf16 MXU operands);
    #    slightly looser tolerance for the bf16 exp vs the f32 reference.
    _check(out1.astype(jnp.bfloat16), tgt1, rtol=2e-3, atol=2e-3)

    # 3) Non-aligned spatial grid (HW = 168) + ragged row tiling (BJ = 15):
    #    exercises the unpadded lane path and the in-kernel row mask.
    B, J, H, W = 3, 5, 12, 14
    out3 = jax.random.normal(k3, (B, J, H, W), dtype=jnp.float32)
    tgt3 = jax.random.uniform(k4, (B, J, 2), dtype=jnp.float32,
                              minval=0.0, maxval=float(min(H, W) - 1))
    _check(out3, tgt3)

    # 4) Multi-tile grid (forced small row tile -> 4 parallel grid steps).
    B, J, H, W = 4, 8, 16, 16
    out4 = jax.random.normal(k5, (B, J, H, W), dtype=jnp.float32)
    tgt4 = jax.random.uniform(k6, (B, J, 2), dtype=jnp.float32,
                              minval=0.0, maxval=float(W - 1))
    _check(out4, tgt4, tile_rows=8)

    print("KERNEL_OK")
</pallas_src>

<mosaic_0001>
module attributes {stable_mosaic.version = 11 : i64} {
  func.func @_soft_argmax_loss_kernel(%arg0: i32, %arg1: memref<8x256xf32, #tpu.memory_space<vmem>>, %arg2: memref<256x128xbf16, #tpu.memory_space<vmem>>, %arg3: memref<8x2xf32, #tpu.memory_space<vmem>>, %arg4: memref<1x1x128xf32, #tpu.memory_space<vmem>>) attributes {dimension_semantics = [#tpu.dimension_semantics<parallel>], iteration_bounds = array<i64: 1>, scalar_prefetch = 0 : i64, scratch_operands = 0 : i64, tpu.core_type = #tpu.core_type<tc>, window_params = [{transform_indices = @transform_0, window_bounds = array<i64: 8, 256>}, {pipeline_mode = #tpu.pipeline_mode<synchronous>, transform_indices = @transform_1, window_bounds = array<i64: 256, 128>}, {transform_indices = @transform_2, window_bounds = array<i64: 8, 2>}, {transform_indices = @transform_3, window_bounds = array<i64: 1, 1, 128>}]} {
    %c0 = arith.constant 0 : index
    %c0_0 = arith.constant 0 : index
    %0 = vector.load %arg1[%c0, %c0_0] : memref<8x256xf32, #tpu.memory_space<vmem>>, vector<8x256xf32>
    %cst = arith.constant dense<0xFF800000> : vector<8xf32>
    %1 = vector.multi_reduction <maximumf>, %0, %cst [1] : vector<8x256xf32> to vector<8xf32>
    %2 = vector.shape_cast %1 : vector<8xf32> to vector<8x1xf32>
    %3 = vector.broadcast %2 : vector<8x1xf32> to vector<8x256xf32>
    %4 = arith.subf %0, %3 : vector<8x256xf32>
    %5 = math.exp %4 : vector<8x256xf32>
    %6 = arith.truncf %5 : vector<8x256xf32> to vector<8x256xbf16>
    %c0_1 = arith.constant 0 : index
    %c0_2 = arith.constant 0 : index
    %7 = vector.load %arg2[%c0_1, %c0_2] : memref<256x128xbf16, #tpu.memory_space<vmem>>, vector<256x128xbf16>
    %cst_3 = arith.constant dense<0.000000e+00> : vector<8x128xf32>
    %8 = tpu.matmul %6, %7, %cst_3 {dimension_numbers = #tpu.dot_dimension_numbers<[1], [0], [0], [1], [0, 0, 1, 1], [], []>} : vector<8x256xbf16>, vector<256x128xbf16>, vector<8x128xf32> -> vector<8x128xf32>
    %9 = vector.extract_strided_slice %8 {offsets = [0, 2], sizes = [8, 1], strides = [1, 1]} : vector<8x128xf32> to vector<8x1xf32>
    %cst_4 = arith.constant 9.99999997E-7 : f32
    %10 = vector.broadcast %cst_4 : f32 to vector<8x1xf32>
    %11 = arith.addf %9, %10 : vector<8x1xf32>
    %cst_5 = arith.constant 1.000000e+00 : f32
    %12 = vector.broadcast %cst_5 : f32 to vector<8x1xf32>
    %13 = arith.divf %12, %11 : vector<8x1xf32>
    %14 = vector.extract_strided_slice %8 {offsets = [0, 0], sizes = [8, 1], strides = [1, 1]} : vector<8x128xf32> to vector<8x1xf32>
    %15 = arith.mulf %14, %13 : vector<8x1xf32>
    %16 = vector.extract_strided_slice %8 {offsets = [0, 1], sizes = [8, 1], strides = [1, 1]} : vector<8x128xf32> to vector<8x1xf32>
    %17 = arith.mulf %16, %13 : vector<8x1xf32>
    %c0_6 = arith.constant 0 : index
    %c0_7 = arith.constant 0 : index
    %18 = vector.load %arg3[%c0_6, %c0_7] : memref<8x2xf32, #tpu.memory_space<vmem>>, vector<8x2xf32>
    %19 = vector.extract_strided_slice %18 {offsets = [0, 0], sizes = [8, 1], strides = [1, 1]} : vector<8x2xf32> to vector<8x1xf32>
    %20 = arith.subf %15, %19 : vector<8x1xf32>
    %21 = vector.extract_strided_slice %18 {offsets = [0, 1], sizes = [8, 1], strides = [1, 1]} : vector<8x2xf32> to vector<8x1xf32>
    %22 = arith.subf %17, %21 : vector<8x1xf32>
    %23 = arith.mulf %20, %20 : vector<8x1xf32>
    %24 = arith.mulf %22, %22 : vector<8x1xf32>
    %25 = arith.addf %23, %24 : vector<8x1xf32>
    %26 = vector.shape_cast %25 : vector<8x1xf32> to vector<1x8x1xf32>
    %cst_8 = arith.constant dense<0.000000e+00> : vector<1xf32>
    %27 = vector.multi_reduction <add>, %26, %cst_8 [1, 2] : vector<1x8x1xf32> to vector<1xf32>
    %28 = vector.shape_cast %27 : vector<1xf32> to vector<1x1x1xf32>
    %29 = vector.extract %28[0, 0, 0] : f32 from vector<1x1x1xf32>
    %30 = vector.broadcast %29 : f32 to vector<1x1x128xf32>
    %c0_9 = arith.constant 0 : index
    %c0_10 = arith.constant 0 : index
    %c0_11 = arith.constant 0 : index
    %31 = vector.load %arg4[%c0_9, %c0_10, %c0_11] : memref<1x1x128xf32, #tpu.memory_space<vmem>>, vector<1x1x128xf32>
    tpu.vector_store %arg4[%c0_9, %c0_10, %c0_11], %30 {strides = array<i32>} : memref<1x1x128xf32, #tpu.memory_space<vmem>>, vector<1x1x128xf32>,
    return
  }
  func.func @transform_0(%arg0: i32) -> (i32, i32) {
    %c0_i32 = arith.constant 0 : i32
    %c0_i32_0 = arith.constant 0 : i32
    return %arg0, %c0_i32 : i32, i32
  }
  func.func @transform_1(%arg0: i32) -> (i32, i32) {
    %c0_i32 = arith.constant 0 : i32
    %c0_i32_0 = arith.constant 0 : i32
    %c0_i32_1 = arith.constant 0 : i32
    return %c0_i32, %c0_i32_0 : i32, i32
  }
  func.func @transform_2(%arg0: i32) -> (i32, i32) {
    %c0_i32 = arith.constant 0 : i32
    %c0_i32_0 = arith.constant 0 : i32
    return %arg0, %c0_i32 : i32, i32
  }
  func.func @transform_3(%arg0: i32) -> (i32, i32, i32) {
    %c0_i32 = arith.constant 0 : i32
    %c0_i32_0 = arith.constant 0 : i32
    %c0_i32_1 = arith.constant 0 : i32
    return %arg0, %c0_i32, %c0_i32_0 : i32, i32, i32
  }
}

</mosaic_0001>

<bundles_post_ra>
// kernel: tpu_custom_call.1
= control target key start
LH: loop header
LB: loop body
LE: loop exit
PB: predicated region body
PF: predicated region fallthrough
CT: control target
= control target key end

     0   :  { %8 = vsyncpa [#allocation3], 0  ;;  %s490_s0 = inlined_call_operand.hbm [shape: f32[8,256], index: 0, kind: input, shape index: {}]   ;;  %s491_s1 = inlined_call_operand.hbm [shape: bf16[256,128], index: 1, kind: input, shape index: {}]   ;;  %s492_s2 = inlined_call_operand.vmem [shape: f32[8,2], index: 2, kind: input, shape index: {}]   ;;  %s493_s3 = inlined_call_operand.hbm [shape: f32[1,1,128], index: 3, kind: output, shape index: {}]  }
   0x1   :  { %9 = vsyncpa [#allocation6], 0 }
   0x2   :  { %10 = vsyncpa [#allocation4], 0  ;;  %s16_s14 = sshll.u32 %s490_s0, 4  ;;  %s451_s15 = smov [#allocation2]   ;;  %s17_s14 = int_to_ptr.hbm [resolvable:$true] %s16_s14 }
   0x3   :  { %s18_s16 = sshll.u32 %s451_s15, 4  ;;  %s26_s19 = sshll.u32 %s491_s1, 4  ;;  %s19_s16 = int_to_ptr.vmem [resolvable:$true] %s18_s16  ;;  %s27_s19 = int_to_ptr.hbm [resolvable:$true] %s26_s19 }
   0x4   :  { %21 = dma.hbm_to_vmem [thread:$0]  %s17_s14, 256, %s19_s16, [#allocation3]  }
   0x5   :  { %s452_s20 = smov [#allocation5]   ;;  %s453_s22 = smov 64  }
   0x6   :  { %s28_s21 = sshll.u32 %s452_s20, 4  ;;  %s454_s23 = smov 4   ;;  %s29_s21 = int_to_ptr.vmem [resolvable:$true] %s28_s21 }
   0x7   :  { %34 = dma.hbm_to_vmem [thread:$0]  %s27_s19, 2048, %s29_s21, [#allocation6], %s453_s22, %s453_s22, %s454_s23  }
   0x8   :  { %445 = dma.done.wait [#allocation3], 256  }
   0x9   :  { %446 = vsyncadd [#allocation3], 4294967040 }
   0xa   :  { %447 = dma.done.wait [#allocation6], 2048  }
   0xb   :  { %448 = vsyncadd [#allocation6], 4294965248  ;;  %v45_v0 = vld [vmem:[#allocation2] sm:$0xff]  ;;  %v46_v1 = vld [vmem:[#allocation2 + $0x8] sm:$0xff]  ;;  %s455_s0 = smov 126   ;;  %s456_s1 = smov 127  }
   0xc   :  { %v349_v2 = vld [vmem:[#allocation5 + $0x38] sm:$0xff]  ;;  %v47_v3 = vmax.f32 %v45_v0, %v46_v1  ;;  %v348_v5 = vld [vmem:[#allocation5 + $0x30] sm:$0xff]  ;;  %v347_v7 = vld [vmem:[#allocation5 + $0x28] sm:$0xff]  ;;  %vm247_vm4 = vcmask 7168   ;;  %s267_s29 = sshll.u32 %s493_s3, 4  ;;  %s268_s29 = int_to_ptr.hbm [resolvable:$true] %s267_s29 }
   0xd   :  { %v357_v4 = vld [vmem:[#allocation5 + $0x78] sm:$0xff]  ;;  %186 = vmatpush.bf16.msra.mxu0 %v349_v2  ;;  %v356_v6 = vld [vmem:[#allocation5 + $0x70] sm:$0xff]  ;;  %v355_v8 = vld [vmem:[#allocation5 + $0x68] sm:$0xff] }
   0xe   :  { %48 = vmax.xlane.f32.xlu0 %v47_v3  ;;  %199 = vmatpush.bf16.msra.mxu1 %v357_v4  ;;  %v346_v9 = vld [vmem:[#allocation5 + $0x20] sm:$0xff]  ;;  %v345_v11 = vld [vmem:[#allocation5 + $0x18] sm:$0xff]  ;;  %v344_v13 = vld [vmem:[#allocation5 + $0x10] sm:$0xff] }
   0xf   :  { %v354_v10 = vld [vmem:[#allocation5 + $0x60] sm:$0xff]  ;;  %v353_v12 = vld [vmem:[#allocation5 + $0x58] sm:$0xff]  ;;  %v352_v14 = vld [vmem:[#allocation5 + $0x50] sm:$0xff] }
  0x10   :  { %v343_v15 = vld [vmem:[#allocation5 + $0x8] sm:$0xff]  ;;  %v342_v17 = vld [vmem:[#allocation5] sm:$0xff]  ;;  %v237_v44 = vld [vmem:[%s492_s2] sm:$0xff]  ;;  %s457_s2 = smov [#allocation7]  }
  0x11   :  { %187 = vmatpush.bf16.msra.mxu0 %v348_v5  ;;  %v351_v16 = vld [vmem:[#allocation5 + $0x48] sm:$0xff]  ;;  %v350_v18 = vld [vmem:[#allocation5 + $0x40] sm:$0xff]  ;;  %s265_s26 = sshll.u32 %s457_s2, 4  ;;  %s266_s26 = int_to_ptr.vmem [resolvable:$true] %s265_s26 }
  0x12   :  { %200 = vmatpush.bf16.msra.mxu1 %v356_v6 }
  0x15   :  { %188 = vmatpush.bf16.msra.mxu0 %v347_v7 }
  0x16   :  { %201 = vmatpush.bf16.msra.mxu1 %v355_v8 }
  0x19   :  { %189 = vmatpush.bf16.msra.mxu0 %v346_v9 }
  0x1a   :  { %202 = vmatpush.bf16.msra.mxu1 %v354_v10 }
  0x1d   :  { %190 = vmatpush.bf16.msra.mxu0 %v345_v11 }
  0x1e   :  { %203 = vmatpush.bf16.msra.mxu1 %v353_v12 }
  0x21   :  { %191 = vmatpush.bf16.msra.mxu0 %v344_v13 }
  0x22   :  { %204 = vmatpush.bf16.msra.mxu1 %v352_v14 }
  0x25   :  { %192 = vmatpush.bf16.msra.mxu0 %v343_v15 }
  0x26   :  { %205 = vmatpush.bf16.msra.mxu1 %v351_v16 }
  0x29   :  { %193 = vmatpush.bf16.msra.mxu0 %v342_v17 }
  0x2a   :  { %206 = vmatpush.bf16.msra.mxu1 %v350_v18 }
  0x81   :  { %v49_v19 = vpop.xlane.xlu0 %48 }
  0x82   :  { %v50_v20 = vsub.f32 %v45_v0, %v49_v19  ;;  %v51_v21 = vsub.f32 %v46_v1, %v49_v19 }
  0x84   :  { %v52_v22 = vmul.f32 1.442695, %v50_v20  ;;  %v54_v23 = vmul.f32 1.442695, %v51_v21 }
  0x86   :  { %367 = vpow2.f32 %v52_v22 }
  0x87   :  { %369 = vpow2.f32 %v54_v23 }
  0x8c   :  { %v368_v24 = vpop.eup %367 }
  0x8d   :  { %v370_v25 = vpop.eup %369  ;;  %v56_v26 = vpack.c.bf16 %v368_v24, %v368_v24 }
  0x8e   :  { %v57_v27 = vpack.c.bf16 %v370_v25, %v370_v25 }
  0x8f   :  { %194 = vmatmul.bf16.vlgmr.msra.gmra.mxu0 %v56_v26 }
  0x90   :  { %207 = vmatmul.bf16.vlgmr.msra.gmra.mxu1 %v57_v27 }
 0x10c   :  { %v195_v28 = vpop.f32.mrf.mxu0 }
 0x10d   :  { %v208_v29 = vpop.f32.mrf.mxu1 }
 0x10e   :  { %v209_v30 = vadd.f32 %v208_v29, %v195_v28 }
 0x110   :  { %v212_v31 = vadd.f32 1e-06, %v209_v30 }
 0x112   :  { %371 = vrcp.f32 %v212_v31  ;;  %v224_v37 = vand.u32 2147483648, %v212_v31  ;;  %v222_v39 = vand.u32 2147483647, %v212_v31  ;;  %vm218_vm1 = vweird.f32 %v212_v31 }
 0x114   :  { %v197_v32 = vpop.f32.mrf.mxu0  ;;  %v225_v41 = vor.u32 1.1754944e-38, %v224_v37  ;;  %vm223_vm3 = vcmp.eq.f32.partialorder %v222_v39, 8.507059e+37 }
 0x115   :  { %v210_v33 = vpop.f32.mrf.mxu1 }
 0x118   :  { %v372_v34 = vpop.eup %371 }
 0x119   :  { %v214_v35 = vmul.f32 %v372_v34, %v212_v31  ;;  %vm219_vm0 = vweird.f32 %v372_v34 }
 0x11a   :  { %vm220_vm2 = vmor %vm218_vm1, %vm219_vm0 }
 0x11b   :  { %v215_v36 = vsub.f32 1.0, %v214_v35 }
 0x11d   :  { %v216_v38 = vmul.f32 %v372_v34, %v215_v36 }
 0x11f   :  { %v217_v40 = vadd.f32 %v372_v34, %v216_v38 }
 0x121   :  { %v221_v42 = vsel %vm220_vm2, %v372_v34, %v217_v40 }
 0x122   :  { %v226_v43 = vsel %vm223_vm3, %v225_v41, %v221_v42 }
 0x123   :  { %229 = vrot.lane.b32.xlu1 %v226_v43, %s455_s0  ;;  %233 = vrot.lane.b32.xlu0 %v226_v43, %s456_s1 }
 0x195   :  { %v234_v45 = vpop.permute.xlu0 %233  ;;  %v230_v49 = vpop.permute.xlu1 %229 }
 0x196   :  { %v236_v46 = vmul.f32 %v234_v45, %v209_v30  ;;  %v232_v50 = vmul.f32 %v230_v49, %v209_v30 }
 0x198   :  { %v239_v47 = vsub.f32 %v236_v46, %v237_v44  ;;  %v238_v51 = vsub.f32 %v232_v50, %v237_v44 }
 0x19a   :  { %v241_v48 = vmul.f32 %v239_v47, %v239_v47  ;;  %v240_v52 = vmul.f32 %v238_v51, %v238_v51 }
 0x19c   :  { %243 = vrot.lane.b32.xlu1 %v241_v48, %s456_s1 }
 0x20e   :  { %v244_v53 = vpop.permute.xlu1 %243 }
 0x20f   :  { %v246_v54 = vadd.f32 %v244_v53, %v240_v52 }
 0x211   :  { %v248_v55 = vsel %vm247_vm4, %v246_v54, 0.0 }
 0x212   :  { %249 = vadd.xlane.f32.xlu2 %v248_v55 }
 0x285   :  { %v250_v56 = vpop.xlane.xlu2 %249 }
 0x286   :  { %v251_v57 = vrot.slane %v250_v56, 4 }
 0x288   :  { %v252_v58 = vadd.f32 %v251_v57, %v250_v56 }
 0x28a   :  { %v253_v59 = vrot.slane %v252_v58, 2 }
 0x28c   :  { %v254_v60 = vadd.f32 %v253_v59, %v252_v58 }
 0x28e   :  { %v255_v61 = vrot.slane %v254_v60, 1 }
 0x290   :  { %v256_v62 = vadd.f32 %v255_v61, %v254_v60 }
 0x292   :  { %358 = vpush %v256_v62 }
 0x2c3   :  { %s359_s30 = spop %358 }
 0x2c4   :  { %v258_v63 = vstv %s359_s30 }
 0x2c5   :  { %259 = vst [vmem:[#allocation7] sm:$0x1] %v258_v63 }
 0x2c6   :  { %270 = dma.vmem_to_hbm [thread:$0]  %s266_s26, 16, %s268_s29, [#allocation4]  }
 0x2c7   :  { %449 = dma.done.wait [#allocation4], 16  }
 0x2c8   :  { %450 = vsyncadd [#allocation4], 4294967280 }
 0x2c9   :  { %275 = vsyncpa [#allocation3], 1 }
 0x2ca   :  { %276 = vsyncpa [#allocation6], 1 }
 0x2cb   :  { %277 = vsyncpa [#allocation4], 1 }

</bundles_post_ra>
